<compile_context>
chip_gen: v5e
topology: v5e:2x2
jax: 0.10.0
libtpu: 0.0.40
codegen_flags: <defaults>
</compile_context>

<pallas_src>
import math

import jax
import jax.numpy as jnp
from jax.experimental import pallas as pl
from jax.experimental.pallas import tpu as pltpu


def _gelu(x):
    # "traditional" gelu from the reference: x * 0.5 * (1 + erf(x / sqrt(2)))
    return x * 0.5 * (1.0 + jax.lax.erf(x / math.sqrt(2.0)))


def _round_up(x, m):
    return (x + m - 1) // m * m


def lm_head_kernel(x_ref, wd_ref, bd_ref, lnw_ref, lnb_ref, emb_ref, decb_ref,
                   out_ref, h_ref):
    # Grid: (row tile i [parallel], vocab tile j [arbitrary, innermost]).
    # Compute the transform (dense + GELU + LayerNorm) only once per row tile
    # and cache it -- already in the decoder matmul dtype -- in VMEM scratch.
    @pl.when(pl.program_id(1) == 0)
    def _transform():
        x = x_ref[...]
        # dense: x [TM, H] contracted with W_dense [H_out, H_in] on trailing H
        # (== x @ W.T) -- f32 accumulation on the MXU, no in-kernel transpose.
        h = jax.lax.dot_general(
            x, wd_ref[...],
            dimension_numbers=(((1,), (1,)), ((), ())),
            preferred_element_type=jnp.float32)
        h = h + bd_ref[...].astype(jnp.float32)
        h = _gelu(h)
        # BertLayerNorm (eps=1e-12) in f32; rsqrt goes to the EUP slot instead
        # of a VPU divide sequence on the (TM, H) tile.
        mean = jnp.mean(h, axis=-1, keepdims=True)
        var = jnp.mean((h - mean) ** 2, axis=-1, keepdims=True)
        h = (h - mean) * jax.lax.rsqrt(var + 1e-12)
        h = lnw_ref[...].astype(jnp.float32) * h + lnb_ref[...].astype(jnp.float32)
        # Single downcast to the decoder compute dtype (bf16 in production):
        # halves the scratch footprint and removes the per-vocab-step
        # f32 reload + cast that the previous version paid V/tv times.
        h_ref[...] = h.astype(h_ref.dtype)

    # decoder: h [TM, H] contracted with the (TV, H) vocab tile of the tied
    # embedding weights on trailing H (== h @ E.T), plus decoder bias tile.
    scores = jax.lax.dot_general(
        h_ref[...], emb_ref[...],
        dimension_numbers=(((1,), (1,)), ((), ())),
        preferred_element_type=jnp.float32)
    scores = scores + decb_ref[...].astype(jnp.float32)
    out_ref[...] = scores.astype(out_ref.dtype)


def bert_pretraining_heads(sequence_output, pooled_output, params, *,
                           row_tile=1024, vocab_tile=2048, out_dtype=None,
                           vmem_limit_bytes=None):
    """sequence_output: [B, S, H]; pooled_output: [B, H].

    params (PyTorch parameter shapes):
      dense_w [H, H], dense_b [H], ln_w [H], ln_b [H],
      emb_w [V, H] (tied embedding / decoder weight), dec_b [V],
      nsp_w [2, H], nsp_b [2].

    Tiling / VMEM guidance per generation (H=1024, bf16, double-buffered):
      v6e / v7x: defaults (row_tile=1024, vocab_tile=2048) ~= 26 MiB, inside the
                 32 MiB default scoped VMEM; do not push past ~48 MiB on v7x
                 (64 MiB physical).
      v5e:       pass row_tile=512, vocab_tile=1024 (~10-13 MiB) or raise
                 vmem_limit_bytes above the 16 MiB default scoped limit.
    Logits are emitted in `out_dtype` (defaults to the activation dtype, i.e.
    bf16 in a bf16 model) -- the N*V write is the HBM floor once embedding
    re-reads are amortized by the large row tile.
    """
    B, S, H = sequence_output.shape
    V, He = params["emb_w"].shape
    assert He == H
    N = B * S
    if out_dtype is None:
        out_dtype = sequence_output.dtype

    x = sequence_output.reshape(N, H)   # contiguous -> free, no copy

    # Row tile: multiple of 8, clamped to the problem size.  Ensure at least two
    # row tiles when possible so both TensorCores get work on v7x megacore
    # (the vocab axis must stay "arbitrary" for the transform cache).
    tm = min(row_tile, _round_up(N, 8))
    tm = max(8, (tm // 8) * 8)
    if pl.cdiv(N, tm) < 2 and N > 8:
        tm = _round_up(pl.cdiv(N, 2), 8)

    # Vocab tile: either the full vocab (tiny problems) or a 128-aligned tile.
    # Ragged last blocks are masked by Pallas, so there is NO per-call padding
    # of emb_w / dec_b and NO output slice/copy in the wrapper.
    if V <= vocab_tile:
        tv = V
    else:
        tv = max(128, (vocab_tile // 128) * 128)

    grid = (pl.cdiv(N, tm), pl.cdiv(V, tv))

    dense_b = params["dense_b"].reshape(1, H)
    ln_w = params["ln_w"].reshape(1, H)
    ln_b = params["ln_b"].reshape(1, H)
    dec_b = params["dec_b"].reshape(1, V)
    emb_w = params["emb_w"]

    scores = pl.pallas_call(
        lm_head_kernel,
        out_shape=jax.ShapeDtypeStruct((N, V), out_dtype),   # exact shape, no pad
        grid_spec=pltpu.PrefetchScalarGridSpec(
            num_scalar_prefetch=0,
            grid=grid,
            in_specs=[
                pl.BlockSpec((tm, H), lambda i, j: (i, 0)),   # x row tile
                pl.BlockSpec((H, H), lambda i, j: (0, 0)),    # dense weight (resident)
                pl.BlockSpec((1, H), lambda i, j: (0, 0)),    # dense bias
                pl.BlockSpec((1, H), lambda i, j: (0, 0)),    # LN weight
                pl.BlockSpec((1, H), lambda i, j: (0, 0)),    # LN bias
                pl.BlockSpec((tv, H), lambda i, j: (j, 0)),   # embedding (decoder) tile
                pl.BlockSpec((1, tv), lambda i, j: (0, j)),   # decoder bias tile
            ],
            out_specs=pl.BlockSpec((tm, tv), lambda i, j: (i, j)),
            # Transform cache in the decoder-matmul dtype (bf16 in production).
            scratch_shapes=[pltpu.VMEM((tm, H), emb_w.dtype)],
        ),
        compiler_params=pltpu.CompilerParams(
            dimension_semantics=("parallel", "arbitrary"),
            vmem_limit_bytes=vmem_limit_bytes,
        ),
    )(x, params["dense_w"], dense_b, ln_w, ln_b, emb_w, dec_b)

    prediction_scores = scores.reshape(B, S, V)   # exact (N, V) -> free reshape

    # NSP head: [B, 2] output is below a single MXU pass and would force a
    # 2-wide masked store path in Pallas; plain XLA is at least as fast.
    seq_relationship_score = pooled_output @ params["nsp_w"].T + params["nsp_b"]

    return prediction_scores, seq_relationship_score


def _reference(sequence_output, pooled_output, params):
    # Plain-JAX reference of the PyTorch forward, for correctness checking.
    h = sequence_output @ params["dense_w"].T + params["dense_b"]
    h = _gelu(h)
    mean = h.mean(-1, keepdims=True)
    var = ((h - mean) ** 2).mean(-1, keepdims=True)
    h = (h - mean) / jnp.sqrt(var + 1e-12)
    h = params["ln_w"] * h + params["ln_b"]
    pred = h @ params["emb_w"].T + params["dec_b"]
    nsp = pooled_output @ params["nsp_w"].T + params["nsp_b"]
    return pred, nsp


if __name__ == "__main__":
    B, S, H, V = 2, 8, 32, 64

    key = jax.random.PRNGKey(0)
    ks = jax.random.split(key, 10)

    params = {
        "dense_w": jax.random.normal(ks[0], (H, H), jnp.float32) * 0.02,
        "dense_b": jax.random.normal(ks[1], (H,), jnp.float32) * 0.02,
        "ln_w": 1.0 + jax.random.normal(ks[2], (H,), jnp.float32) * 0.02,
        "ln_b": jax.random.normal(ks[3], (H,), jnp.float32) * 0.02,
        "emb_w": jax.random.normal(ks[4], (V, H), jnp.float32) * 0.02,  # tied embedding
        "dec_b": jax.random.normal(ks[5], (V,), jnp.float32) * 0.02,
        "nsp_w": jax.random.normal(ks[6], (2, H), jnp.float32) * 0.02,
        "nsp_b": jax.random.normal(ks[7], (2,), jnp.float32) * 0.02,
    }

    sequence_output = jax.random.normal(ks[8], (B, S, H), jnp.float32)
    pooled_output = jax.random.normal(ks[9], (B, H), jnp.float32)

    pred, nsp = bert_pretraining_heads(sequence_output, pooled_output, params)
    jax.block_until_ready((pred, nsp))

    pred_ref, nsp_ref = _reference(sequence_output, pooled_output, params)
    assert pred.shape == (B, S, V) and nsp.shape == (B, 2)
    assert jnp.allclose(pred, pred_ref, atol=1e-5, rtol=1e-5), \
        float(jnp.max(jnp.abs(pred - pred_ref)))
    assert jnp.allclose(nsp, nsp_ref, atol=1e-5, rtol=1e-5)

    print("KERNEL_OK")
</pallas_src>

<mosaic_0001>
module attributes {stable_mosaic.version = 11 : i64} {
  func.func @lm_head_kernel(%arg0: i32, %arg1: i32, %arg2: memref<8x32xf32, #tpu.memory_space<vmem>>, %arg3: memref<32x32xf32, #tpu.memory_space<vmem>>, %arg4: memref<1x32xf32, #tpu.memory_space<vmem>>, %arg5: memref<1x32xf32, #tpu.memory_space<vmem>>, %arg6: memref<1x32xf32, #tpu.memory_space<vmem>>, %arg7: memref<64x32xf32, #tpu.memory_space<vmem>>, %arg8: memref<1x64xf32, #tpu.memory_space<vmem>>, %arg9: memref<8x64xf32, #tpu.memory_space<vmem>>, %arg10: memref<8x32xf32, #tpu.memory_space<vmem>>) attributes {dimension_semantics = [#tpu.dimension_semantics<parallel>, #tpu.dimension_semantics<arbitrary>], iteration_bounds = array<i64: 2, 1>, scalar_prefetch = 0 : i64, scratch_operands = 1 : i64, tpu.core_type = #tpu.core_type<tc>, window_params = [{transform_indices = @transform_0, window_bounds = array<i64: 8, 32>}, {pipeline_mode = #tpu.pipeline_mode<synchronous>, transform_indices = @transform_1, window_bounds = array<i64: 32, 32>}, {pipeline_mode = #tpu.pipeline_mode<synchronous>, transform_indices = @transform_2, window_bounds = array<i64: 1, 32>}, {pipeline_mode = #tpu.pipeline_mode<synchronous>, transform_indices = @transform_3, window_bounds = array<i64: 1, 32>}, {pipeline_mode = #tpu.pipeline_mode<synchronous>, transform_indices = @transform_4, window_bounds = array<i64: 1, 32>}, {transform_indices = @transform_5, window_bounds = array<i64: 64, 32>}, {transform_indices = @transform_6, window_bounds = array<i64: 1, 64>}, {transform_indices = @transform_7, window_bounds = array<i64: 8, 64>}]} {
    %c0_i32 = arith.constant 0 : i32
    %0 = arith.cmpi eq, %arg1, %c0_i32 : i32
    %1 = arith.extui %0 : i1 to i32
    %c0_i32_0 = arith.constant 0 : i32
    %2 = arith.cmpi ne, %1, %c0_i32_0 : i32
    scf.if %2 {
      %c0_8 = arith.constant 0 : index
      %c0_9 = arith.constant 0 : index
      %10 = vector.load %arg2[%c0_8, %c0_9] : memref<8x32xf32, #tpu.memory_space<vmem>>, vector<8x32xf32>
      %c0_10 = arith.constant 0 : index
      %c0_11 = arith.constant 0 : index
      %11 = vector.load %arg3[%c0_10, %c0_11] : memref<32x32xf32, #tpu.memory_space<vmem>>, vector<32x32xf32>
      %cst_12 = arith.constant dense<0.000000e+00> : vector<8x32xf32>
      %12 = tpu.matmul %10, %11, %cst_12 {dimension_numbers = #tpu.dot_dimension_numbers<[1], [1], [0], [0], [0, 0, 1, 0], [], []>} : vector<8x32xf32>, vector<32x32xf32>, vector<8x32xf32> -> vector<8x32xf32>
      %c0_13 = arith.constant 0 : index
      %c0_14 = arith.constant 0 : index
      %13 = vector.load %arg4[%c0_13, %c0_14] : memref<1x32xf32, #tpu.memory_space<vmem>>, vector<1x32xf32>
      %14 = vector.broadcast %13 : vector<1x32xf32> to vector<8x32xf32>
      %15 = arith.addf %12, %14 : vector<8x32xf32>
      %cst_15 = arith.constant 5.000000e-01 : f32
      %16 = vector.broadcast %cst_15 : f32 to vector<8x32xf32>
      %17 = arith.mulf %15, %16 : vector<8x32xf32>
      %cst_16 = arith.constant 1.41421354 : f32
      %18 = vector.broadcast %cst_16 : f32 to vector<8x32xf32>
      %19 = arith.divf %15, %18 : vector<8x32xf32>
      %20 = math.erf %19 : vector<8x32xf32>
      %cst_17 = arith.constant 1.000000e+00 : f32
      %21 = vector.broadcast %cst_17 : f32 to vector<8x32xf32>
      %22 = arith.addf %21, %20 : vector<8x32xf32>
      %23 = arith.mulf %17, %22 : vector<8x32xf32>
      %cst_18 = arith.constant dense<0.000000e+00> : vector<8xf32>
      %24 = vector.multi_reduction <add>, %23, %cst_18 [1] : vector<8x32xf32> to vector<8xf32>
      %25 = vector.shape_cast %24 : vector<8xf32> to vector<8x1xf32>
      %cst_19 = arith.constant 3.200000e+01 : f32
      %26 = vector.broadcast %cst_19 : f32 to vector<8x1xf32>
      %27 = arith.divf %25, %26 : vector<8x1xf32>
      %28 = vector.broadcast %27 : vector<8x1xf32> to vector<8x32xf32>
      %29 = arith.subf %23, %28 : vector<8x32xf32>
      %30 = arith.mulf %29, %29 : vector<8x32xf32>
      %cst_20 = arith.constant dense<0.000000e+00> : vector<8xf32>
      %31 = vector.multi_reduction <add>, %30, %cst_20 [1] : vector<8x32xf32> to vector<8xf32>
      %32 = vector.shape_cast %31 : vector<8xf32> to vector<8x1xf32>
      %cst_21 = arith.constant 3.200000e+01 : f32
      %33 = vector.broadcast %cst_21 : f32 to vector<8x1xf32>
      %34 = arith.divf %32, %33 : vector<8x1xf32>
      %35 = vector.broadcast %27 : vector<8x1xf32> to vector<8x32xf32>
      %36 = arith.subf %23, %35 : vector<8x32xf32>
      %cst_22 = arith.constant 9.99999996E-13 : f32
      %37 = vector.broadcast %cst_22 : f32 to vector<8x1xf32>
      %38 = arith.addf %34, %37 : vector<8x1xf32>
      %39 = math.rsqrt %38 : vector<8x1xf32>
      %40 = vector.broadcast %39 : vector<8x1xf32> to vector<8x32xf32>
      %41 = arith.mulf %36, %40 : vector<8x32xf32>
      %c0_23 = arith.constant 0 : index
      %c0_24 = arith.constant 0 : index
      %42 = vector.load %arg5[%c0_23, %c0_24] : memref<1x32xf32, #tpu.memory_space<vmem>>, vector<1x32xf32>
      %43 = vector.broadcast %42 : vector<1x32xf32> to vector<8x32xf32>
      %44 = arith.mulf %43, %41 : vector<8x32xf32>
      %c0_25 = arith.constant 0 : index
      %c0_26 = arith.constant 0 : index
      %45 = vector.load %arg6[%c0_25, %c0_26] : memref<1x32xf32, #tpu.memory_space<vmem>>, vector<1x32xf32>
      %46 = vector.broadcast %45 : vector<1x32xf32> to vector<8x32xf32>
      %47 = arith.addf %44, %46 : vector<8x32xf32>
      %c0_27 = arith.constant 0 : index
      %c0_28 = arith.constant 0 : index
      %48 = vector.load %arg10[%c0_27, %c0_28] : memref<8x32xf32, #tpu.memory_space<vmem>>, vector<8x32xf32>
      tpu.vector_store %arg10[%c0_27, %c0_28], %47 {strides = array<i32>} : memref<8x32xf32, #tpu.memory_space<vmem>>, vector<8x32xf32>,
    } else {
    }
    %c0 = arith.constant 0 : index
    %c0_1 = arith.constant 0 : index
    %3 = vector.load %arg10[%c0, %c0_1] : memref<8x32xf32, #tpu.memory_space<vmem>>, vector<8x32xf32>
    %c0_2 = arith.constant 0 : index
    %c0_3 = arith.constant 0 : index
    %4 = vector.load %arg7[%c0_2, %c0_3] : memref<64x32xf32, #tpu.memory_space<vmem>>, vector<64x32xf32>
    %cst = arith.constant dense<0.000000e+00> : vector<8x64xf32>
    %5 = tpu.matmul %3, %4, %cst {dimension_numbers = #tpu.dot_dimension_numbers<[1], [1], [0], [0], [0, 0, 1, 0], [], []>} : vector<8x32xf32>, vector<64x32xf32>, vector<8x64xf32> -> vector<8x64xf32>
    %c0_4 = arith.constant 0 : index
    %c0_5 = arith.constant 0 : index
    %6 = vector.load %arg8[%c0_4, %c0_5] : memref<1x64xf32, #tpu.memory_space<vmem>>, vector<1x64xf32>
    %7 = vector.broadcast %6 : vector<1x64xf32> to vector<8x64xf32>
    %8 = arith.addf %5, %7 : vector<8x64xf32>
    %c0_6 = arith.constant 0 : index
    %c0_7 = arith.constant 0 : index
    %9 = vector.load %arg9[%c0_6, %c0_7] : memref<8x64xf32, #tpu.memory_space<vmem>>, vector<8x64xf32>
    tpu.vector_store %arg9[%c0_6, %c0_7], %8 {strides = array<i32>} : memref<8x64xf32, #tpu.memory_space<vmem>>, vector<8x64xf32>,
    return
  }
  func.func @transform_0(%arg0: i32, %arg1: i32) -> (i32, i32) {
    %c0_i32 = arith.constant 0 : i32
    %c0_i32_0 = arith.constant 0 : i32
    return %arg0, %c0_i32 : i32, i32
  }
  func.func @transform_1(%arg0: i32, %arg1: i32) -> (i32, i32) {
    %c0_i32 = arith.constant 0 : i32
    %c0_i32_0 = arith.constant 0 : i32
    %c0_i32_1 = arith.constant 0 : i32
    return %c0_i32, %c0_i32_0 : i32, i32
  }
  func.func @transform_2(%arg0: i32, %arg1: i32) -> (i32, i32) {
    %c0_i32 = arith.constant 0 : i32
    %c0_i32_0 = arith.constant 0 : i32
    %c0_i32_1 = arith.constant 0 : i32
    return %c0_i32, %c0_i32_0 : i32, i32
  }
  func.func @transform_3(%arg0: i32, %arg1: i32) -> (i32, i32) {
    %c0_i32 = arith.constant 0 : i32
    %c0_i32_0 = arith.constant 0 : i32
    %c0_i32_1 = arith.constant 0 : i32
    return %c0_i32, %c0_i32_0 : i32, i32
  }
  func.func @transform_4(%arg0: i32, %arg1: i32) -> (i32, i32) {
    %c0_i32 = arith.constant 0 : i32
    %c0_i32_0 = arith.constant 0 : i32
    %c0_i32_1 = arith.constant 0 : i32
    return %c0_i32, %c0_i32_0 : i32, i32
  }
  func.func @transform_5(%arg0: i32, %arg1: i32) -> (i32, i32) {
    %c0_i32 = arith.constant 0 : i32
    %c0_i32_0 = arith.constant 0 : i32
    return %arg1, %c0_i32 : i32, i32
  }
  func.func @transform_6(%arg0: i32, %arg1: i32) -> (i32, i32) {
    %c0_i32 = arith.constant 0 : i32
    %c0_i32_0 = arith.constant 0 : i32
    return %c0_i32, %arg1 : i32, i32
  }
  func.func @transform_7(%arg0: i32, %arg1: i32) -> (i32, i32) {
    %c0_i32 = arith.constant 0 : i32
    return %arg0, %arg1 : i32, i32
  }
}

</mosaic_0001>

<bundles_post_ra>
// kernel: tpu_custom_call.1
= control target key start
LH: loop header
LB: loop body
LE: loop exit
PB: predicated region body
PF: predicated region fallthrough
CT: control target
= control target key end

     0   :  { %12 = vsyncpa [#allocation4], 0  ;;  %s1020_s0 = inlined_call_operand.vmem [shape: f32[16,32], index: 0, kind: input, shape index: {}]   ;;  %s1021_s1 = inlined_call_operand.vmem [shape: f32[32,32], index: 1, kind: input, shape index: {}]   ;;  %s1022_s2 = inlined_call_operand.vmem [shape: f32[1,32], index: 2, kind: input, shape index: {}]   ;;  %s1023_s3 = inlined_call_operand.vmem [shape: f32[1,32], index: 3, kind: input, shape index: {}]   ;;  %s1024_s4 = inlined_call_operand.vmem [shape: f32[1,32], index: 4, kind: input, shape index: {}]   ;;  %s1025_s5 = inlined_call_operand.vmem [shape: f32[64,32], index: 5, kind: input, shape index: {}]   ;;  %s1026_s6 = inlined_call_operand.vmem [shape: f32[1,64], index: 6, kind: input, shape index: {}]   ;;  %s1027_s7 = inlined_call_operand.hbm [shape: f32[16,64], index: 7, kind: output, shape index: {}]  }
   0x1   :  { %14 = vsyncpa [#allocation4 + $0x1], 0  ;;  %s858_s24 = smov 0   ;;  %s860_s25 = smov 0  }
   0x2   :  { %s862_s26 = smov 0   ;;  %s864_s27 = smov 0  }
   0x3   :  { %s866_s28 = smov 0   ;;  %s868_s29 = smov 0  }
   0x4 LB: > { %s639_s30 = sadd.s32 4294967295, %s814_s29   ;;  %s640_s8 = sadd.s32 4294967294, %s814_s29   ;;  %s814_s29 = sphi %s868_s29, %s20_s29   ;;  %s810_s28 = sphi %s866_s28, %s1034_s28   ;;  %s806_s27 = sphi %s864_s27, %s1033_s27   ;;  %s802_s26 = sphi %s862_s26, %s1032_s26   ;;  %s798_s25 = sphi %s860_s25, %s1031_s25   ;;  %s794_s24 = sphi %s858_s24, %s1030_s24  }
   0x5   : > { %s32_s9 = sadd.s32 1, %s810_s28  ;;  %s203_s10 = sadd.s32 1, %s802_s26 }
   0x6   : > { %p34_p0 = scmp.ge.s32.totalorder %s32_s9, 2  ;;  %p213_p1 = scmp.ne.s32.totalorder %s802_s26, %s798_s25 }
   0x7   : > { %p214_p2 = scmp.eq.s32.totalorder %s639_s30, 1  ;;  %p219_p3 = scmp.ne.s32.totalorder %s798_s25, %s794_s24 }
   0x8   : > { %s1036_s9 = smov (%p34_p0, %s32_s9), 0  ;;  %p220_p5 = scmp.eq.s32.totalorder %s640_s8, 1 }
   0x9   : > { %p898_p4 = por %p214_p2, %p213_p1  ;;  %s198_s12 = ssub.s32 %s810_s28, %s1036_s9 }
   0xa   : > { %p645_p6 = scmp.ge.s32.totalorder %s814_s29, 1  ;;  %p201_p7 = scmp.eq.s32.totalorder %s198_s12, 0 }
   0xb   : > { %p905_p8 = por %p220_p5, %p219_p3  ;;  %p272_p9 = scmp.lt.s32.totalorder %s814_s29, 3 }
   0xc   : > { %s911_s14 = scalar_select %p201_p7, %s802_s26, %s203_s10  }
   0xd   : > { %p273_p10 = pnand %p645_p6, %p272_p9 }
   0xe   : > { %p311_p11 = scmp.lt.s32.totalorder (!%p273_p10), %s806_s27, 1  ;;  %s308_s30 = sand.u32 (!%p273_p10), 1, %s798_s25  }
   0xf   : > { %276 = sbr.rel (%p273_p10) target bundleno = 622 (0x26e), region = 48  ;;  %s646_s8 = sshll.u32 (!%p273_p10), %s308_s30, 3 }
  0x10   : > { %s664_s10 = sshll.u32 (!%p273_p10), %s806_s27, 3 }
  0x11   : > { %s539_s16 = scalar_lea.hbm (!%p273_p10), %s1027_s7, %s664_s10 }
  0x12   : > { %s543_s21 = sshll.u32 (!%p273_p10), %s539_s16, 4  ;;  %s544_s21 = int_to_ptr.hbm [resolvable:$true] %s543_s21 }
  0x14   : > { %v332_v0 = vld [vmem:[%s1021_s1 + $0x18] sm:$0xff]  ;;  %vm337_vm0 = vcmask 261120   ;;  %v331_v1 = vld [vmem:[%s1021_s1 + $0x10] sm:$0xff]  ;;  %s312_s19 = scalar_select %p311_p11, %s806_s27, 1  ;;  %v330_v2 = vld [vmem:[%s1021_s1 + $0x8] sm:$0xff]  ;;  %v817_v55 = vmov 32.0  }
  0x15   : > { %648 = vmatpush.xpose.msk.msra.mxu0 %vm337_vm0, %v332_v0  ;;  %v329_v3 = vld [vmem:[%s1021_s1] sm:$0xff]  ;;  %v816_v5 = vmov 1.4142135   ;;  %vm525_vm10 = vcmask 523264   ;;  %s750_s27 = sshra.s32 %s544_s21, 4  ;;  %s751_s27 = int_to_ptr.hbm [resolvable:$true] %s750_s27 }
  0x16   : > { %s647_s22 = sshll.u32 %s312_s19, 3  ;;  %728 = vrcp.f32 %v816_v5  ;;  %v724_v11 = vld [vmem:[%s1022_s2] ss:$0 sm:$0xff]  ;;  %v470_v5 = vld [vmem:[%s1025_s5 + $0x28] sm:$0xff]  ;;  %s310_s19 = scalar_lea.vmem [#allocation3], %s646_s8 }
  0x17   : > { %s314_s12 = scalar_lea.vmem %s1020_s0, %s647_s22  ;;  %s541_s20 = sshll.u32 %s310_s19, 4  ;;  %s542_s20 = int_to_ptr.vmem [resolvable:$true] %s541_s20 }
  0x18   : > { %v328_v4 = vld [vmem:[%s314_s12] sm:$0xff]  ;;  %s528_s22 = scalar_lea.sflag [#allocation4], %s308_s30  ;;  %s752_s23 = scalar_lea.hbm %s751_s27, 8 }
  0x19   : > { %649 = vmatpush.xpose.msk.msra.mxu0 %vm337_vm0, %v331_v1  ;;  %p753_p12 = scmp.ne.s32.totalorder %s751_s27, %s752_s23  ;;  %s756_s8 = scalar_lea.hbm %s1027_s7, 16 }
  0x1a   : > { %p757_p1 = scmp.lt.s32.totalorder %s751_s27, %s1027_s7  ;;  %p758_p2 = scmp.lt.s32.totalorder %s756_s8, %s752_s23 }
  0x1b   : > { %p754_p13 = pnand %p753_p12, %p898_p4 }
  0x1c   : > { %v729_v6 = vpop.eup %728  ;;  %p759_p3 = por %p758_p2, %p757_p1 }
  0x1d   : > { %650 = vmatpush.xpose.msk.msra.mxu0 %vm337_vm0, %v330_v2  ;;  %v375_v7 = vmul.f32 1.4142135, %v729_v6  ;;  %vm379_vm1 = vweird.f32 %v729_v6  ;;  %p755_p0 = pneg %p754_p13 }
  0x1f   : > { %v376_v8 = vsub.f32 1.0, %v375_v7  ;;  %v468_v7 = vld [vmem:[%s1025_s5 + $0x18] sm:$0xff]  ;;  %p760_p5 = pnand %p759_p3, %p755_p0 }
  0x21   : > { %651 = vmatpush.xpose.msk.msra.mxu0 %vm337_vm0, %v329_v3  ;;  %v377_v9 = vmul.f32 %v729_v6, %v376_v8  ;;  %v472_v3 = vld [vmem:[%s1025_s5 + $0x38] sm:$0xff]  ;;  %v467_v8 = vld [vmem:[%s1025_s5 + $0x10] sm:$0xff] }
  0x22   : > { %654 = vmatpush.xpose.msk.msra.mxu1 %vm337_vm0, %v472_v3 }
  0x23   : > { %v378_v10 = vadd.f32 %v729_v6, %v377_v9  ;;  %v466_v9 = vld [vmem:[%s1025_s5 + $0x8] sm:$0xff] }
  0x24   : > { %652 = vmatmul.msk.f32.vlgmr.msra.gmra.mxu0 %vm337_vm0, %v328_v4  ;;  %v471_v4 = vld [vmem:[%s1025_s5 + $0x30] sm:$0xff] }
  0x25   : > { %v380_v13 = vsel %vm379_vm1, %v729_v6, %v378_v10  ;;  %v469_v6 = vld [vmem:[%s1025_s5 + $0x20] sm:$0xff] }
  0x26   : > { %655 = vmatpush.xpose.msk.msra.mxu1 %vm337_vm0, %v471_v4 }
  0x2a   : > { %656 = vmatpush.xpose.msk.msra.mxu1 %vm337_vm0, %v470_v5 }
  0x2e   : > { %657 = vmatpush.xpose.msk.msra.mxu1 %vm337_vm0, %v469_v6 }
  0x32   : > { %658 = vmatpush.xpose.msk.msra.mxu1 %vm337_vm0, %v468_v7 }
  0x36   : > { %659 = vmatpush.xpose.msk.msra.mxu1 %vm337_vm0, %v467_v8 }
  0x3a   : > { %660 = vmatpush.xpose.msk.msra.mxu1 %vm337_vm0, %v466_v9 }
  0xa1   : > { %v370_v12 = vpop.f32.mrf.mxu0 }
  0xa2   : > { %v371_v14 = vadd.f32 %v724_v11, %v370_v12  ;;  %v465_v11 = vld [vmem:[%s1025_s5] sm:$0xff] }
  0xa3   : > { %661 = vmatpush.xpose.msk.msra.mxu1 %vm337_vm0, %v465_v11 }
  0xa4   : > { %v381_v15 = vmul.f32 %v380_v13, %v371_v14  ;;  %v373_v51 = vmul.f32 0.5, %v371_v14 }
  0xa6   : > { %v382_v16 = vmul.f32 %v381_v15, %v381_v15 }
  0xa8   : > { %v383_v17 = vmin.f32 %v382_v16, 16.0 }
  0xaa   : > { %v384_v18 = vmul.f32 2.1237322e-06, %v383_v17  ;;  %v395_v19 = vmul.f32 3.8918573e-05, %v383_v17 }
  0xac   : > { %v385_v20 = vadd.f32 0.00028619796, %v384_v18  ;;  %v396_v21 = vadd.f32 0.001143296, %v395_v19 }
  0xae   : > { %v386_v22 = vmul.f32 %v385_v20, %v383_v17  ;;  %v397_v23 = vmul.f32 %v396_v21, %v383_v17  ;;  %v725_v20 = vld [vmem:[%s1023_s3] ss:$0 sm:$0xff] }
  0xb0   : > { %v398_v24 = vadd.f32 0.014752088, %v397_v23  ;;  %v387_v25 = vadd.f32 0.0036580483, %v386_v22  ;;  %v726_v22 = vld [vmem:[%s1024_s4] ss:$0 sm:$0xff] }
  0xb2   : > { %v399_v26 = vmul.f32 %v398_v24, %v383_v17  ;;  %v388_v28 = vmul.f32 %v387_v25, %v383_v17 }
  0xb4   : > { %v400_v27 = vadd.f32 0.112945676, %v399_v26  ;;  %v389_v31 = vadd.f32 0.05243302, %v388_v28 }
  0xb6   : > { %v401_v29 = vmul.f32 %v400_v27, %v383_v17  ;;  %v390_v34 = vmul.f32 %v389_v31, %v383_v17  ;;  %v727_v27 = vld [vmem:[%s1026_s6] ss:$0 sm:$0xff] }
  0xb8   : > { %v402_v30 = vadd.f32 0.4994258, %v401_v29  ;;  %v391_v35 = vadd.f32 0.18741608, %v390_v34 }
  0xba   : > { %v403_v32 = vmul.f32 %v402_v30, %v383_v17  ;;  %v392_v37 = vmul.f32 %v391_v35, %v383_v17 }
  0xbc   : > { %v404_v33 = vadd.f32 1.0, %v403_v32  ;;  %v393_v41 = vadd.f32 1.1283791, %v392_v37 }
  0xbe   : > { %730 = vrcp.f32 %v404_v33  ;;  %v416_v40 = vand.u32 2147483648, %v404_v33  ;;  %v414_v43 = vand.u32 2147483647, %v404_v33  ;;  %vm410_vm3 = vweird.f32 %v404_v33 }
  0xbf   : > { %v394_v46 = vmul.f32 %v393_v41, %v381_v15  ;;  %732 = vrcp.f32 %v817_v55 }
  0xc0   : > { %v417_v45 = vor.u32 1.1754944e-38, %v416_v40  ;;  %vm415_vm5 = vcmp.eq.f32.partialorder %v414_v43, 8.507059e+37 }
  0xc4   : > { %v731_v36 = vpop.eup %730 }
  0xc5   : > { %v406_v38 = vmul.f32 %v731_v36, %v404_v33  ;;  %vm411_vm2 = vweird.f32 %v731_v36  ;;  %v733_v56 = vpop.eup %732 }
  0xc6   : > { %vm412_vm4 = vmor %vm410_vm3, %vm411_vm2  ;;  %v428_v57 = vmul.f32 32.0, %v733_v56  ;;  %vm432_vm6 = vweird.f32 %v733_v56 }
  0xc7   : > { %v407_v39 = vsub.f32 1.0, %v406_v38 }
  0xc8   : > { %v429_v58 = vsub.f32 1.0, %v428_v57 }
  0xc9   : > { %v408_v42 = vmul.f32 %v731_v36, %v407_v39 }
  0xca   : > { %v430_v59 = vmul.f32 %v733_v56, %v429_v58 }
  0xcb   : > { %v409_v44 = vadd.f32 %v731_v36, %v408_v42 }
  0xcc   : > { %v431_v60 = vadd.f32 %v733_v56, %v430_v59 }
  0xcd   : > { %v413_v47 = vsel %vm412_vm4, %v731_v36, %v409_v44 }
  0xce   : > { %v418_v48 = vsel %vm415_vm5, %v417_v45, %v413_v47  ;;  %v433_v61 = vsel %vm432_vm6, %v733_v56, %v431_v60 }
  0xcf   : > { %v419_v49 = vmul.f32 %v418_v48, %v394_v46 }
  0xd1   : > { %v653_v50 = vclamps-f32 %v419_v49, 1.0 }
  0xd3   : > { %v422_v52 = vadd.f32 1.0, %v653_v50 }
  0xd5   : > { %v423_v53 = vmul.f32 %v422_v52, %v373_v51 }
  0xd7   : > { %v424_v54 = vsel %vm337_vm0, %v423_v53, 0.0 }
  0xd8   : > { %425 = vadd.xlane.f32.xlu0 %v424_v54 }
 0x14b   : > { %v426_v62 = vpop.xlane.xlu0 %425 }
 0x14c   : > { %v434_v63 = vmul.f32 %v433_v61, %v426_v62 }
 0x14e   : > { %v435_v0 = vsub.f32 %v423_v53, %v434_v63 }
 0x150   : > { %v436_v1 = vmul.f32 %v435_v0, %v435_v0 }
 0x152   : > { %v437_v2 = vsel %vm337_vm0, %v436_v1, 0.0 }
 0x153   : > { %438 = vadd.xlane.f32.xlu0 %v437_v2 }
 0x1c6   : > { %v439_v10 = vpop.xlane.xlu0 %438 }
 0x1c7   : > { %v440_v12 = vmul.f32 %v439_v10, %v433_v61 }
 0x1c9   : > { %v441_v13 = vadd.f32 1e-12, %v440_v12 }
 0x1cb   : > { %734 = vrsqrt.f32 %v441_v13  ;;  %vm448_vm8 = vweird.f32 %v441_v13 }
 0x1d1   : > { %v735_v14 = vpop.eup %734 }
 0x1d2   : > { %v443_v15 = vmul.f32 %v735_v14, %v441_v13  ;;  %vm449_vm7 = vweird.f32 %v735_v14 }
 0x1d3   : > { %vm450_vm9 = vmor %vm448_vm8, %vm449_vm7 }
 0x1d4   : > { %v444_v16 = vmul.f32 %v735_v14, %v443_v15 }
 0x1d6   : > { %v445_v17 = vmul.f32 0.5, %v444_v16 }
 0x1d8   : > { %v446_v18 = vsub.f32 1.5, %v445_v17 }
 0x1da   : > { %v447_v19 = vmul.f32 %v735_v14, %v446_v18 }
 0x1dc   : > { %v451_v21 = vsel %vm450_vm9, %v735_v14, %v447_v19 }
 0x1dd   : > { %v452_v23 = vmul.f32 %v451_v21, %v435_v0 }
 0x1df   : > { %v457_v24 = vmul.f32 %v725_v20, %v452_v23 }
 0x1e1   : > { %v462_v25 = vadd.f32 %v726_v22, %v457_v24 }
 0x1e3   : > { %463 = vst.msk [vmem:[#allocation2] sm:$0xff] %vm337_vm0, %v462_v25 }
 0x1ea   : > { %v464_v26 = vld [vmem:[#allocation2] sm:$0xff] }
 0x1eb   : > { %662 = vmatmul.msk.f32.vlgmr.msra.gmra.mxu1 %vm337_vm0, %v464_v26 }
 0x268   : > { %v522_v28 = vpop.f32.mrf.mxu1 }
 0x269   : > { %v523_v29 = vadd.f32 %v727_v27, %v522_v28 }
 0x26b   : > { %526 = vst.msk [vmem:[%s310_s19] sm:$0xff] %vm525_vm10, %v523_v29 }
 0x26c   : > { %763 = shalt.err (!%p760_p5)
}
 0x26d   : > { %667 = dma.vmem_to_hbm [thread:$0]  (%p898_p4), %s542_s20, 128, %s544_s21, %s528_s22  }
 0x26e PF: > { %p673_p6 = scmp.ge.s32.totalorder %s814_s29, 2  ;;  %s555_s30 = sand.u32 1, %s794_s24  }
 0x26f   : > { %s556_s17 = scalar_lea.sflag [#allocation4], %s555_s30 }
 0x270   : > { %p670_p7 = pnand %p673_p6, %p905_p8 }
 0x272   : > { %p671_p9 = pneg %p670_p7 }
 0x274   : > { %789 = dma.done.wait (%p671_p9), %s556_s17, 128  }
 0x275   : > { %791 = vsyncadd (%p671_p9), %s556_s17, 4294967168  ;;  %s20_s29 = sadd.s32 1, %s814_s29   ;;  %s1030_s24 = smov %s798_s25 }
 0x276   : > { %p17_p10 = scmp.ge.s32.totalorder %s20_s29, 4   ;;  %s1031_s25 = smov %s802_s26 }
 0x277   : > { %s1032_s26 = smov %s911_s14  ;;  %s1033_s27 = smov %s810_s28 }
 0x278   : > { %s1034_s28 = smov %s1036_s9  ;;  %19 = sbr.rel (!%p17_p10) target bundleno = 4 (0x4), region = 93 }
 0x27d   :  { %562 = vsyncpa [#allocation4], 1 }
 0x27e   :  { %564 = vsyncpa [#allocation4 + $0x1], 1 }

</bundles_post_ra>
